<compile_context>
chip_gen: v5e
topology: v5e:2x2
jax: 0.10.0
libtpu: 0.0.40
codegen_flags: <defaults>
</compile_context>

<pallas_src>
import jax
import jax.numpy as jnp
from jax.experimental import pallas as pl
from jax.experimental.pallas import tpu as pltpu

HIDDEN = 256
LANE = 128
SUBLANE = 8


def _round_up(x, m):
    return (x + m - 1) // m * m


def _mlp_decoder_kernel(x_ref, w1_ref, b1_ref, w2_ref, b2_ref, o_ref):
    # x:  (TB, latent_dim) f32     w1: (latent_dim, 256) f32   b1: (1, 256) f32
    # w2: (256, n_pix_pad)  bf16   b2: (1, n_pix_pad)  f32
    # o:  (TB, n_pix_pad)   f32
    x = x_ref[...]
    w1 = w1_ref[...]
    latent_dim = x.shape[1]
    hidden = w1.shape[1]

    # fc1 as VPU broadcast-FMAs: K = latent_dim (5) would leave the MXU almost
    # entirely idle and pay an MXU result-FIFO round trip for no math.
    h = jnp.broadcast_to(b1_ref[...], (x.shape[0], hidden))
    for k in range(latent_dim):                      # static unroll (tiny K)
        h = h + x[:, k:k + 1] * w1[k:k + 1, :]
    h = jnp.tanh(h)                                  # f32 transcendental (EUP)

    # fc2: bf16 x bf16 -> f32 accumulate on the MXU, lane-dense N = n_pix_pad.
    logits = jnp.dot(h.astype(jnp.bfloat16), w2_ref[...],
                     preferred_element_type=jnp.float32) + b2_ref[...]
    o_ref[...] = jax.nn.sigmoid(logits).astype(o_ref.dtype)


def prepare_decoder_params(w1, b1, w2, b2, slen):
    """One-time packing of PyTorch-layout params for the kernel.

    Pads w2/b2 columns 784 -> 896 with zeros (padded lanes are sliced off in the
    wrapper so they never leak into the output) and casts w2 to bf16.
    """
    n_pixels = slen * slen
    n_pix_pad = _round_up(n_pixels, LANE)
    pad = n_pix_pad - n_pixels
    w2_p = jnp.pad(w2, ((0, 0), (0, pad))).astype(jnp.bfloat16)
    b2_p = jnp.pad(b2.reshape(1, -1), ((0, 0), (0, pad))).astype(jnp.float32)
    b1_p = b1.reshape(1, -1).astype(jnp.float32)
    return w1.astype(jnp.float32), b1_p, w2_p, b2_p


def mlp_decoder_forward(latent_samples, w1, b1_2d, w2_bf16, b2_2d, slen):
    """latent_samples: (B, latent_dim) f32 -> (B, 1, slen, slen) f32.

    Params must already be packed by prepare_decoder_params.
    """
    B, latent_dim = latent_samples.shape
    n_pixels = slen * slen
    n_pix_pad = w2_bf16.shape[1]

    # Sublane-align the batch, and tile big batches so activations stream while
    # the weights stay resident (constant index_maps below). Batch axis is
    # "parallel" so v7x's second TensorCore gets used when there are >1 tiles.
    tile_b = min(512, _round_up(B, SUBLANE))
    b_pad = _round_up(B, tile_b)
    x = latent_samples.astype(jnp.float32)
    if b_pad != B:
        x = jnp.pad(x, ((0, b_pad - B), (0, 0)))
    nb = b_pad // tile_b

    cost = pl.CostEstimate(
        flops=2 * b_pad * (latent_dim * HIDDEN + HIDDEN * n_pix_pad),
        transcendentals=b_pad * (HIDDEN + n_pix_pad),
        bytes_accessed=(x.size * 4 + w1.size * 4 + b1_2d.size * 4
                        + w2_bf16.size * 2 + b2_2d.size * 4
                        + b_pad * n_pix_pad * 4),
    )

    out = pl.pallas_call(
        _mlp_decoder_kernel,
        out_shape=jax.ShapeDtypeStruct((b_pad, n_pix_pad), jnp.float32),
        grid_spec=pltpu.PrefetchScalarGridSpec(
            num_scalar_prefetch=0,
            grid=(nb,),
            in_specs=[
                pl.BlockSpec((tile_b, latent_dim), lambda i: (i, 0)),
                # Weights/biases: constant block index -> loaded once, resident
                # in VMEM across all batch tiles.
                pl.BlockSpec(w1.shape, lambda i: (0, 0)),
                pl.BlockSpec(b1_2d.shape, lambda i: (0, 0)),
                pl.BlockSpec(w2_bf16.shape, lambda i: (0, 0)),
                pl.BlockSpec(b2_2d.shape, lambda i: (0, 0)),
            ],
            out_specs=pl.BlockSpec((tile_b, n_pix_pad), lambda i: (i, 0)),
        ),
        compiler_params=pltpu.CompilerParams(
            dimension_semantics=("parallel",),
        ),
        cost_estimate=cost,
    )(x, w1, b1_2d, w2_bf16, b2_2d)

    # Drop batch/lane padding, then match PyTorch's .view(-1, 1, slen, slen).
    return out[:B, :n_pixels].reshape(B, 1, slen, slen)


def init_params(key, latent_dim, slen):
    """nn.Linear-style U(-1/sqrt(fan_in), 1/sqrt(fan_in)) init in f32 (PyTorch math).

    Stored transposed relative to PyTorch (in_features, out_features) so the
    kernel computes x @ W directly.
    """
    n_pixels = slen * slen
    k1, k2, k3, k4 = jax.random.split(key, 4)
    bound1 = 1.0 / jnp.sqrt(latent_dim)
    bound2 = 1.0 / jnp.sqrt(HIDDEN)
    w1 = jax.random.uniform(k1, (latent_dim, HIDDEN), jnp.float32, -bound1, bound1)
    b1 = jax.random.uniform(k2, (HIDDEN,), jnp.float32, -bound1, bound1)
    w2 = jax.random.uniform(k3, (HIDDEN, n_pixels), jnp.float32, -bound2, bound2)
    b2 = jax.random.uniform(k4, (n_pixels,), jnp.float32, -bound2, bound2)
    return w1, b1, w2, b2


if __name__ == "__main__":
    latent_dim = 5
    slen = 28
    batch = 2

    key = jax.random.PRNGKey(0)
    pkey, xkey = jax.random.split(key)
    w1, b1, w2, b2 = init_params(pkey, latent_dim, slen)
    latent_samples = jax.random.normal(xkey, (batch, latent_dim), jnp.float32)

    # One-time packing: lane-pad 784 -> 896 and cast w2 to bf16.
    w1_p, b1_p, w2_p, b2_p = prepare_decoder_params(w1, b1, w2, b2, slen)

    out = mlp_decoder_forward(latent_samples, w1_p, b1_p, w2_p, b2_p, slen)
    out = jax.block_until_ready(out)

    # Reference in plain JAX with the original f32 params (same math as the
    # PyTorch forward). Tolerance covers the bf16 weights/activations fed to
    # the MXU (~1e-3 expected error on sigmoid outputs).
    ref = jax.nn.sigmoid(
        jnp.tanh(latent_samples @ w1 + b1) @ w2 + b2
    ).reshape(batch, 1, slen, slen)
    assert out.shape == (batch, 1, slen, slen), out.shape
    err = float(jnp.max(jnp.abs(out - ref)))
    assert err < 1e-2, f"mismatch vs reference, max abs err = {err}"

    print("KERNEL_OK")
</pallas_src>

<mosaic_0001>
module attributes {stable_mosaic.version = 11 : i64} {
  func.func @_mlp_decoder_kernel(%arg0: i32, %arg1: memref<8x5xf32, #tpu.memory_space<vmem>>, %arg2: memref<5x256xf32, #tpu.memory_space<vmem>>, %arg3: memref<1x256xf32, #tpu.memory_space<vmem>>, %arg4: memref<256x896xbf16, #tpu.memory_space<vmem>>, %arg5: memref<1x896xf32, #tpu.memory_space<vmem>>, %arg6: memref<8x896xf32, #tpu.memory_space<vmem>>) attributes {dimension_semantics = [#tpu.dimension_semantics<parallel>], iteration_bounds = array<i64: 1>, scalar_prefetch = 0 : i64, scratch_operands = 0 : i64, tpu.core_type = #tpu.core_type<tc>, window_params = [{transform_indices = @transform_0, window_bounds = array<i64: 8, 5>}, {pipeline_mode = #tpu.pipeline_mode<synchronous>, transform_indices = @transform_1, window_bounds = array<i64: 5, 256>}, {pipeline_mode = #tpu.pipeline_mode<synchronous>, transform_indices = @transform_2, window_bounds = array<i64: 1, 256>}, {pipeline_mode = #tpu.pipeline_mode<synchronous>, transform_indices = @transform_3, window_bounds = array<i64: 256, 896>}, {pipeline_mode = #tpu.pipeline_mode<synchronous>, transform_indices = @transform_4, window_bounds = array<i64: 1, 896>}, {transform_indices = @transform_5, window_bounds = array<i64: 8, 896>}]} {
    %c0 = arith.constant 0 : index
    %c0_0 = arith.constant 0 : index
    %0 = vector.load %arg1[%c0, %c0_0] : memref<8x5xf32, #tpu.memory_space<vmem>>, vector<8x5xf32>
    %c0_1 = arith.constant 0 : index
    %c0_2 = arith.constant 0 : index
    %1 = vector.load %arg2[%c0_1, %c0_2] : memref<5x256xf32, #tpu.memory_space<vmem>>, vector<5x256xf32>
    %c0_3 = arith.constant 0 : index
    %c0_4 = arith.constant 0 : index
    %2 = vector.load %arg3[%c0_3, %c0_4] : memref<1x256xf32, #tpu.memory_space<vmem>>, vector<1x256xf32>
    %3 = vector.shape_cast %2 : vector<1x256xf32> to vector<1x256xf32>
    %4 = vector.broadcast %3 : vector<1x256xf32> to vector<8x256xf32>
    %5 = vector.extract_strided_slice %0 {offsets = [0, 0], sizes = [8, 1], strides = [1, 1]} : vector<8x5xf32> to vector<8x1xf32>
    %6 = vector.extract_strided_slice %1 {offsets = [0, 0], sizes = [1, 256], strides = [1, 1]} : vector<5x256xf32> to vector<1x256xf32>
    %7 = vector.broadcast %5 : vector<8x1xf32> to vector<8x256xf32>
    %8 = vector.broadcast %6 : vector<1x256xf32> to vector<8x256xf32>
    %9 = arith.mulf %7, %8 : vector<8x256xf32>
    %10 = arith.addf %4, %9 : vector<8x256xf32>
    %11 = vector.extract_strided_slice %0 {offsets = [0, 1], sizes = [8, 1], strides = [1, 1]} : vector<8x5xf32> to vector<8x1xf32>
    %12 = vector.extract_strided_slice %1 {offsets = [1, 0], sizes = [1, 256], strides = [1, 1]} : vector<5x256xf32> to vector<1x256xf32>
    %13 = vector.broadcast %11 : vector<8x1xf32> to vector<8x256xf32>
    %14 = vector.broadcast %12 : vector<1x256xf32> to vector<8x256xf32>
    %15 = arith.mulf %13, %14 : vector<8x256xf32>
    %16 = arith.addf %10, %15 : vector<8x256xf32>
    %17 = vector.extract_strided_slice %0 {offsets = [0, 2], sizes = [8, 1], strides = [1, 1]} : vector<8x5xf32> to vector<8x1xf32>
    %18 = vector.extract_strided_slice %1 {offsets = [2, 0], sizes = [1, 256], strides = [1, 1]} : vector<5x256xf32> to vector<1x256xf32>
    %19 = vector.broadcast %17 : vector<8x1xf32> to vector<8x256xf32>
    %20 = vector.broadcast %18 : vector<1x256xf32> to vector<8x256xf32>
    %21 = arith.mulf %19, %20 : vector<8x256xf32>
    %22 = arith.addf %16, %21 : vector<8x256xf32>
    %23 = vector.extract_strided_slice %0 {offsets = [0, 3], sizes = [8, 1], strides = [1, 1]} : vector<8x5xf32> to vector<8x1xf32>
    %24 = vector.extract_strided_slice %1 {offsets = [3, 0], sizes = [1, 256], strides = [1, 1]} : vector<5x256xf32> to vector<1x256xf32>
    %25 = vector.broadcast %23 : vector<8x1xf32> to vector<8x256xf32>
    %26 = vector.broadcast %24 : vector<1x256xf32> to vector<8x256xf32>
    %27 = arith.mulf %25, %26 : vector<8x256xf32>
    %28 = arith.addf %22, %27 : vector<8x256xf32>
    %29 = vector.extract_strided_slice %0 {offsets = [0, 4], sizes = [8, 1], strides = [1, 1]} : vector<8x5xf32> to vector<8x1xf32>
    %30 = vector.extract_strided_slice %1 {offsets = [4, 0], sizes = [1, 256], strides = [1, 1]} : vector<5x256xf32> to vector<1x256xf32>
    %31 = vector.broadcast %29 : vector<8x1xf32> to vector<8x256xf32>
    %32 = vector.broadcast %30 : vector<1x256xf32> to vector<8x256xf32>
    %33 = arith.mulf %31, %32 : vector<8x256xf32>
    %34 = arith.addf %28, %33 : vector<8x256xf32>
    %35 = math.tanh %34 : vector<8x256xf32>
    %36 = arith.truncf %35 : vector<8x256xf32> to vector<8x256xbf16>
    %c0_5 = arith.constant 0 : index
    %c0_6 = arith.constant 0 : index
    %37 = vector.load %arg4[%c0_5, %c0_6] : memref<256x896xbf16, #tpu.memory_space<vmem>>, vector<256x896xbf16>
    %cst = arith.constant dense<0.000000e+00> : vector<8x896xf32>
    %38 = tpu.matmul %36, %37, %cst {dimension_numbers = #tpu.dot_dimension_numbers<[1], [0], [0], [1], [0, 0, 1, 1], [], []>} : vector<8x256xbf16>, vector<256x896xbf16>, vector<8x896xf32> -> vector<8x896xf32>
    %c0_7 = arith.constant 0 : index
    %c0_8 = arith.constant 0 : index
    %39 = vector.load %arg5[%c0_7, %c0_8] : memref<1x896xf32, #tpu.memory_space<vmem>>, vector<1x896xf32>
    %40 = vector.broadcast %39 : vector<1x896xf32> to vector<8x896xf32>
    %41 = arith.addf %38, %40 : vector<8x896xf32>
    %42 = arith.negf %41 : vector<8x896xf32>
    %43 = math.exp %42 : vector<8x896xf32>
    %cst_9 = arith.constant 1.000000e+00 : f32
    %44 = vector.broadcast %cst_9 : f32 to vector<8x896xf32>
    %45 = arith.addf %44, %43 : vector<8x896xf32>
    %46 = arith.divf %44, %45 : vector<8x896xf32>
    %c0_10 = arith.constant 0 : index
    %c0_11 = arith.constant 0 : index
    %47 = vector.load %arg6[%c0_10, %c0_11] : memref<8x896xf32, #tpu.memory_space<vmem>>, vector<8x896xf32>
    tpu.vector_store %arg6[%c0_10, %c0_11], %46 {strides = array<i32>} : memref<8x896xf32, #tpu.memory_space<vmem>>, vector<8x896xf32>,
    return
  }
  func.func @transform_0(%arg0: i32) -> (i32, i32) {
    %c0_i32 = arith.constant 0 : i32
    %c0_i32_0 = arith.constant 0 : i32
    return %arg0, %c0_i32 : i32, i32
  }
  func.func @transform_1(%arg0: i32) -> (i32, i32) {
    %c0_i32 = arith.constant 0 : i32
    %c0_i32_0 = arith.constant 0 : i32
    %c0_i32_1 = arith.constant 0 : i32
    return %c0_i32, %c0_i32_0 : i32, i32
  }
  func.func @transform_2(%arg0: i32) -> (i32, i32) {
    %c0_i32 = arith.constant 0 : i32
    %c0_i32_0 = arith.constant 0 : i32
    %c0_i32_1 = arith.constant 0 : i32
    return %c0_i32, %c0_i32_0 : i32, i32
  }
  func.func @transform_3(%arg0: i32) -> (i32, i32) {
    %c0_i32 = arith.constant 0 : i32
    %c0_i32_0 = arith.constant 0 : i32
    %c0_i32_1 = arith.constant 0 : i32
    return %c0_i32, %c0_i32_0 : i32, i32
  }
  func.func @transform_4(%arg0: i32) -> (i32, i32) {
    %c0_i32 = arith.constant 0 : i32
    %c0_i32_0 = arith.constant 0 : i32
    %c0_i32_1 = arith.constant 0 : i32
    return %c0_i32, %c0_i32_0 : i32, i32
  }
  func.func @transform_5(%arg0: i32) -> (i32, i32) {
    %c0_i32 = arith.constant 0 : i32
    %c0_i32_0 = arith.constant 0 : i32
    return %arg0, %c0_i32 : i32, i32
  }
}

</mosaic_0001>

<bundles_post_ra>
// kernel: tpu_custom_call.1
= control target key start
LH: loop header
LB: loop body
LE: loop exit
PB: predicated region body
PF: predicated region fallthrough
CT: control target
= control target key end

     0   :  { %10 = vsyncpa [#allocation3], 0  ;;  %s2076_s0 = inlined_call_operand.hbm [shape: f32[8,5], index: 0, kind: input, shape index: {}]   ;;  %s2077_s1 = inlined_call_operand.hbm [shape: f32[5,256], index: 1, kind: input, shape index: {}]   ;;  %s2078_s2 = inlined_call_operand.hbm [shape: f32[1,256], index: 2, kind: input, shape index: {}]   ;;  %s2079_s3 = inlined_call_operand.hbm [shape: bf16[256,896], index: 3, kind: input, shape index: {}]   ;;  %s2080_s4 = inlined_call_operand.hbm [shape: f32[1,896], index: 4, kind: input, shape index: {}]   ;;  %s2081_s5 = inlined_call_operand.hbm [shape: f32[8,896], index: 5, kind: output, shape index: {}]  }
   0x1   :  { %11 = vsyncpa [#allocation6], 0 }
   0x2   :  { %12 = vsyncpa [#allocation9], 0  ;;  %s30_s20 = sshll.u32 %s2077_s1, 4  ;;  %s31_s20 = int_to_ptr.hbm [resolvable:$true] %s30_s20 }
   0x3   :  { %13 = vsyncpa [#allocation4], 0  ;;  %s1986_s21 = smov [#allocation5]   ;;  %s51_s25 = sshll.u32 %s2079_s3, 4  ;;  %s52_s25 = int_to_ptr.hbm [resolvable:$true] %s51_s25 }
   0x4   :  { %s32_s22 = sshll.u32 %s1986_s21, 4  ;;  %s1987_s26 = smov [#allocation8]   ;;  %s33_s22 = int_to_ptr.vmem [resolvable:$true] %s32_s22 }
   0x5   :  { %35 = dma.hbm_to_vmem [thread:$0]  %s31_s20, 256, %s33_s22, [#allocation6]  }
   0x6   :  { %s53_s27 = sshll.u32 %s1987_s26, 4  ;;  %s1988_s28 = smov 448   ;;  %s54_s27 = int_to_ptr.vmem [resolvable:$true] %s53_s27 }
   0x7   :  { %s1989_s29 = smov 28   ;;  %s19_s1 = sshll.u32 %s2076_s0, 4  ;;  %s20_s1 = int_to_ptr.hbm [resolvable:$true] %s19_s1 }
   0x8   :  { %59 = dma.hbm_to_vmem [thread:$0]  %s52_s25, 14336, %s54_s27, [#allocation9], %s1988_s28, %s1988_s28, %s1989_s29  }
   0x9   :  { %s1990_s7 = smov [#allocation2]   ;;  %s41_s3 = sshll.u32 %s2078_s2, 4  ;;  %s42_s3 = int_to_ptr.hbm [resolvable:$true] %s41_s3 }
   0xa   :  { %s21_s8 = sshll.u32 %s1990_s7, 4  ;;  %s1991_s11 = smov [#allocation7]   ;;  %s22_s8 = int_to_ptr.vmem [resolvable:$true] %s21_s8 }
   0xb   :  { %24 = dma.hbm_to_vmem [thread:$0]  %s20_s1, 128, %s22_s8, [#allocation3]  }
   0xc   :  { %s43_s12 = sshll.u32 %s1991_s11, 4  ;;  %s65_s15 = sshll.u32 %s2080_s4, 4  ;;  %s44_s12 = int_to_ptr.vmem [resolvable:$true] %s43_s12  ;;  %s66_s15 = int_to_ptr.hbm [resolvable:$true] %s65_s15 }
   0xd   :  { %46 = dma.hbm_to_vmem [thread:$0]  %s42_s3, 32, %s44_s12, [#allocation6]  }
   0xe   :  { %s1992_s0 = smov [#allocation10]  }
   0xf   :  { %s67_s16 = sshll.u32 %s1992_s0, 4  ;;  %s68_s16 = int_to_ptr.vmem [resolvable:$true] %s67_s16 }
  0x10   :  { %70 = dma.hbm_to_vmem [thread:$0]  %s66_s15, 112, %s68_s16, [#allocation9]  }
  0x11   :  { %1978 = dma.done.wait [#allocation3], 128  }
  0x12   :  { %1979 = vsyncadd [#allocation3], 4294967168 }
  0x13   :  { %1980 = dma.done.wait [#allocation6], 288  }
  0x14   :  { %1981 = vsyncadd [#allocation6], 4294967008 }
  0x15   :  { %1982 = dma.done.wait [#allocation9], 14448  }
  0x16   :  { %1983 = vsyncadd [#allocation9], 4294952848  ;;  %v1993_v0 = vmov 0   ;;  %v1994_v1 = vmov 2   ;;  %v1995_v2 = vmov 4   ;;  %v91_v3 = vld [vmem:[#allocation2] sm:$0xff] }
  0x17   :  { %1796 = vset.pattern.permute.xlu0 %v1993_v0  ;;  %1798 = vset.pattern.permute.xlu1 %v1994_v1  ;;  %v1414_v4 = vld [vmem:[#allocation8 + $0x188] sm:$0xf]  ;;  %v1723_v5 = vld [vmem:[#allocation8 + $0x1a0] sm:$0xf0]  ;;  %v1720_v9 = vld [vmem:[#allocation8 + $0x18c] sm:$0xf] }
  0x18   :  { %1800 = vset.pattern.permute.xlu2 %v1995_v2  ;;  %102 = vperm.xlu0 %1796, %v91_v3   ;;  %v1415_v6 = vor.u32 %v1723_v5, %v1414_v4  ;;  %v1638_v7 = vld [vmem:[#allocation8 + $0x348] sm:$0xf]  ;;  %v1779_v8 = vld [vmem:[#allocation8 + $0x360] sm:$0xf0]  ;;  %v1776_v12 = vld [vmem:[#allocation8 + $0x34c] sm:$0xf] }
  0x19   :  { %122 = vperm.xlu1 %1798, %v91_v3   ;;  %142 = vperm.xlu2 %1800, %v91_v3   ;;  %v1639_v10 = vor.u32 %v1779_v8, %v1638_v7  ;;  %v1416_v11 = vld [vmem:[#allocation8 + $0x1a4] sm:$0xf0]  ;;  %v1386_v16 = vld [vmem:[#allocation8 + $0x150] sm:$0xf]  ;;  %v1716_v17 = vld [vmem:[#allocation8 + $0x168] sm:$0xf0] }
  0x1a   :  { %v1640_v13 = vld [vmem:[#allocation8 + $0x364] sm:$0xf0]  ;;  %875 = vmatpush.bf16.msra.mxu0 %v1415_v6  ;;  %v1419_v14 = vor.u32 %v1720_v9, %v1416_v11  ;;  %v1610_v18 = vld [vmem:[#allocation8 + $0x310] sm:$0xf]  ;;  %v1387_v19 = vor.u32 %v1716_v17, %v1386_v16  ;;  %v1772_v20 = vld [vmem:[#allocation8 + $0x328] sm:$0xf0] }
  0x1b   :  { %v1643_v15 = vor.u32 %v1776_v12, %v1640_v13  ;;  %888 = vmatpush.bf16.msra.mxu1 %v1639_v10  ;;  %v1713_v21 = vld [vmem:[#allocation8 + $0x154] sm:$0xf]  ;;  %v1388_v22 = vld [vmem:[#allocation8 + $0x16c] sm:$0xf0]  ;;  %v1611_v23 = vor.u32 %v1772_v20, %v1610_v18  ;;  %v1358_v26 = vld [vmem:[#allocation8 + $0x118] sm:$0xf] }
  0x1c   :  { %901 = vmatpush.bf16.msra.mxu2 %v1419_v14  ;;  %v1769_v24 = vld [vmem:[#allocation8 + $0x314] sm:$0xf]  ;;  %v1612_v25 = vld [vmem:[#allocation8 + $0x32c] sm:$0xf0]  ;;  %v1582_v28 = vld [vmem:[#allocation8 + $0x2d8] sm:$0xf]  ;;  %v1391_v30 = vor.u32 %v1713_v21, %v1388_v22 }
  0x1d   :  { %914 = vmatpush.bf16.msra.mxu3 %v1643_v15  ;;  %v1709_v27 = vld [vmem:[#allocation8 + $0x130] sm:$0xf0]  ;;  %v1615_v31 = vor.u32 %v1769_v24, %v1612_v25  ;;  %v1706_v32 = vld [vmem:[#allocation8 + $0x11c] sm:$0xf]  ;;  %v1360_v33 = vld [vmem:[#allocation8 + $0x134] sm:$0xf0] }
  0x1e   :  { %v1765_v29 = vld [vmem:[#allocation8 + $0x2f0] sm:$0xf0]  ;;  %876 = vmatpush.bf16.msra.mxu0 %v1387_v19  ;;  %v1359_v34 = vor.u32 %v1709_v27, %v1358_v26  ;;  %v1762_v36 = vld [vmem:[#allocation8 + $0x2dc] sm:$0xf]  ;;  %v1584_v37 = vld [vmem:[#allocation8 + $0x2f4] sm:$0xf0]  ;;  %v1363_v44 = vor.u32 %v1706_v32, %v1360_v33 }
  0x1f   :  { %889 = vmatpush.bf16.msra.mxu1 %v1611_v23  ;;  %v1583_v35 = vor.u32 %v1765_v29, %v1582_v28  ;;  %v1330_v38 = vld [vmem:[#allocation8 + $0xe0] sm:$0xf]  ;;  %v1996_v39 = vmov 1   ;;  %v1997_v40 = vmov 3   ;;  %v1702_v41 = vld [vmem:[#allocation8 + $0xf8] sm:$0xf0]  ;;  %v1587_v45 = vor.u32 %v1762_v36, %v1584_v37 }
  0x20   :  { %1797 = vset.pattern.permute.xlu0 %v1996_v39  ;;  %v1554_v42 = vld [vmem:[#allocation8 + $0x2a0] sm:$0xf]  ;;  %v1758_v43 = vld [vmem:[#allocation8 + $0x2b8] sm:$0xf0]  ;;  %902 = vmatpush.bf16.msra.mxu2 %v1391_v30  ;;  %v1699_v46 = vld [vmem:[#allocation8 + $0xe4] sm:$0xf]  ;;  %v1331_v48 = vor.u32 %v1702_v41, %v1330_v38 }
  0x21   :  { %1799 = vset.pattern.permute.xlu1 %v1997_v40  ;;  %112 = vperm.xlu0 %1797, %v91_v3   ;;  %v1332_v47 = vld [vmem:[#allocation8 + $0xfc] sm:$0xf0]  ;;  %v1555_v49 = vor.u32 %v1758_v43, %v1554_v42  ;;  %v1755_v50 = vld [vmem:[#allocation8 + $0x2a4] sm:$0xf]  ;;  %v1302_v52 = vld [vmem:[#allocation8 + $0xa8] sm:$0xf] }
  0x22   :  { %132 = vperm.xlu1 %1799, %v91_v3   ;;  %915 = vmatpush.bf16.msra.mxu3 %v1615_v31  ;;  %v1556_v51 = vld [vmem:[#allocation8 + $0x2bc] sm:$0xf0]  ;;  %v1695_v53 = vld [vmem:[#allocation8 + $0xc0] sm:$0xf0]  ;;  %v1526_v54 = vld [vmem:[#allocation8 + $0x268] sm:$0xf]  ;;  %v1335_v56 = vor.u32 %v1699_v46, %v1332_v47 }
  0x23   :  { %877 = vmatpush.bf16.msra.mxu0 %v1359_v34  ;;  %890 = vmatpush.bf16.msra.mxu1 %v1583_v35  ;;  %v1751_v55 = vld [vmem:[#allocation8 + $0x280] sm:$0xf0]  ;;  %v1559_v57 = vor.u32 %v1755_v50, %v1556_v51  ;;  %v1692_v58 = vld [vmem:[#allocation8 + $0xac] sm:$0xf]  ;;  %v1304_v59 = vld [vmem:[#allocation8 + $0xc4] sm:$0xf0]  ;;  %v1303_v60 = vor.u32 %v1695_v53, %v1302_v52 }
  0x24   :  { %903 = vmatpush.bf16.msra.mxu2 %v1363_v44  ;;  %v1527_v61 = vor.u32 %v1751_v55, %v1526_v54  ;;  %v1748_v62 = vld [vmem:[#allocation8 + $0x26c] sm:$0xf]  ;;  %v1528_v63 = vld [vmem:[#allocation8 + $0x284] sm:$0xf0]  ;;  %v1274_v0 = vld [vmem:[#allocation8 + $0x70] sm:$0xf]  ;;  %v1307_v5 = vor.u32 %v1692_v58, %v1304_v59 }
  0x25   :  { %v1688_v1 = vld [vmem:[#allocation8 + $0x88] sm:$0xf0]  ;;  %v1498_v3 = vld [vmem:[#allocation8 + $0x230] sm:$0xf]  ;;  %v1531_v6 = vor.u32 %v1748_v62, %v1528_v63  ;;  %v1685_v7 = vld [vmem:[#allocation8 + $0x74] sm:$0xf] }
  0x26   :  { %916 = vmatpush.bf16.msra.mxu3 %v1587_v45  ;;  %v1744_v4 = vld [vmem:[#allocation8 + $0x248] sm:$0xf0]  ;;  %v1276_v8 = vld [vmem:[#allocation8 + $0x8c] sm:$0xf0]  ;;  %v1275_v9 = vor.u32 %v1688_v1, %v1274_v0  ;;  %v1741_v11 = vld [vmem:[#allocation8 + $0x234] sm:$0xf] }
  0x27   :  { %878 = vmatpush.bf16.msra.mxu0 %v1331_v48  ;;  %891 = vmatpush.bf16.msra.mxu1 %v1555_v49  ;;  %v1499_v10 = vor.u32 %v1744_v4, %v1498_v3  ;;  %v1500_v12 = vld [vmem:[#allocation8 + $0x24c] sm:$0xf0]  ;;  %v1246_v13 = vld [vmem:[#allocation8 + $0x38] sm:$0xf]  ;;  %v1681_v14 = vld [vmem:[#allocation8 + $0x50] sm:$0xf0]  ;;  %v1279_v17 = vor.u32 %v1685_v7, %v1276_v8 }
  0x28   :  { %904 = vmatpush.bf16.msra.mxu2 %v1335_v56  ;;  %v1470_v15 = vld [vmem:[#allocation8 + $0x1f8] sm:$0xf]  ;;  %v1737_v16 = vld [vmem:[#allocation8 + $0x210] sm:$0xf0]  ;;  %v1678_v18 = vld [vmem:[#allocation8 + $0x3c] sm:$0xf]  ;;  %v1247_v21 = vor.u32 %v1681_v14, %v1246_v13 }
  0x29   :  { %1801 = vset.pattern.permute.xlu0 %v1995_v2  ;;  %v1503_v2 = vor.u32 %v1741_v11, %v1500_v12  ;;  %v1248_v19 = vld [vmem:[#allocation8 + $0x54] sm:$0xf0]  ;;  %v1734_v20 = vld [vmem:[#allocation8 + $0x1fc] sm:$0xf]  ;;  %v1471_v22 = vor.u32 %v1737_v16, %v1470_v15  ;;  %v1218_v24 = vld [vmem:[#allocation8] sm:$0xf] }
  0x2a   :  { %917 = vmatpush.bf16.msra.mxu3 %v1559_v57  ;;  %v1472_v23 = vld [vmem:[#allocation8 + $0x214] sm:$0xf0]  ;;  %v1674_v25 = vld [vmem:[#allocation8 + $0x18] sm:$0xf0]  ;;  %v1442_v26 = vld [vmem:[#allocation8 + $0x1c0] sm:$0xf]  ;;  %v1251_v32 = vor.u32 %v1678_v18, %v1248_v19 }
  0x2b   :  { %879 = vmatpush.bf16.msra.mxu0 %v1303_v60  ;;  %892 = vmatpush.bf16.msra.mxu1 %v1527_v61  ;;  %v1730_v27 = vld [vmem:[#allocation8 + $0x1d8] sm:$0xf0]  ;;  %v1422_v28 = vld [vmem:[#allocation8 + $0x190] sm:$0xf]  ;;  %v1724_v29 = vld [vmem:[#allocation8 + $0x1a8] sm:$0xf0]  ;;  %v1475_v33 = vor.u32 %v1734_v20, %v1472_v23  ;;  %v1219_v35 = vor.u32 %v1674_v25, %v1218_v24 }
  0x2c   :  { %905 = vmatpush.bf16.msra.mxu2 %v1307_v5  ;;  %v1646_v30 = vld [vmem:[#allocation8 + $0x350] sm:$0xf]  ;;  %v1780_v31 = vld [vmem:[#allocation8 + $0x368] sm:$0xf0]  ;;  %v1671_v34 = vld [vmem:[#allocation8 + $0x4] sm:$0xf]  ;;  %v1443_v36 = vor.u32 %v1730_v27, %v1442_v26  ;;  %v1423_v40 = vor.u32 %v1724_v29, %v1422_v28 }
  0x2d   :  { %v1220_v37 = vld [vmem:[#allocation8 + $0x1c] sm:$0xf0]  ;;  %v1727_v38 = vld [vmem:[#allocation8 + $0x1c4] sm:$0xf]  ;;  %v1647_v41 = vor.u32 %v1780_v31, %v1646_v30  ;;  %v1721_v44 = vld [vmem:[#allocation8 + $0x194] sm:$0xf] }
  0x2e   :  { %918 = vmatpush.bf16.msra.mxu3 %v1531_v6  ;;  %v1444_v39 = vld [vmem:[#allocation8 + $0x1dc] sm:$0xf0]  ;;  %v1223_v42 = vor.u32 %v1671_v34, %v1220_v37  ;;  %v1424_v45 = vld [vmem:[#allocation8 + $0x1ac] sm:$0xf0]  ;;  %v1777_v46 = vld [vmem:[#allocation8 + $0x354] sm:$0xf] }
  0x2f   :  { %880 = vmatpush.bf16.msra.mxu0 %v1275_v9  ;;  %893 = vmatpush.bf16.msra.mxu1 %v1499_v10  ;;  %v1447_v43 = vor.u32 %v1727_v38, %v1444_v39  ;;  %v1427_v47 = vor.u32 %v1721_v44, %v1424_v45  ;;  %v1648_v48 = vld [vmem:[#allocation8 + $0x36c] sm:$0xf0]  ;;  %v1394_v50 = vld [vmem:[#allocation8 + $0x158] sm:$0xf]  ;;  %v1717_v51 = vld [vmem:[#allocation8 + $0x170] sm:$0xf0] }
  0x30   :  { %906 = vmatpush.bf16.msra.mxu2 %v1279_v17  ;;  %v1651_v49 = vor.u32 %v1777_v46, %v1648_v48  ;;  %v1618_v52 = vld [vmem:[#allocation8 + $0x318] sm:$0xf]  ;;  %v1395_v53 = vor.u32 %v1717_v51, %v1394_v50  ;;  %v1773_v54 = vld [vmem:[#allocation8 + $0x330] sm:$0xf0]  ;;  %v1714_v55 = vld [vmem:[#allocation8 + $0x15c] sm:$0xf] }
  0x31   :  { %v1396_v56 = vld [vmem:[#allocation8 + $0x174] sm:$0xf0]  ;;  %v1619_v57 = vor.u32 %v1773_v54, %v1618_v52  ;;  %v1770_v59 = vld [vmem:[#allocation8 + $0x31c] sm:$0xf]  ;;  %v1366_v62 = vld [vmem:[#allocation8 + $0x120] sm:$0xf] }
  0x32   :  { %919 = vmatpush.bf16.msra.mxu3 %v1503_v2  ;;  %v1399_v58 = vor.u32 %v1714_v55, %v1396_v56  ;;  %v1620_v60 = vld [vmem:[#allocation8 + $0x334] sm:$0xf0]  ;;  %v1710_v63 = vld [vmem:[#allocation8 + $0x138] sm:$0xf0]  ;;  %v1590_v0 = vld [vmem:[#allocation8 + $0x2e0] sm:$0xf] }
  0x33   :  { %881 = vmatpush.bf16.msra.mxu0 %v1247_v21  ;;  %894 = vmatpush.bf16.msra.mxu1 %v1471_v22  ;;  %v1623_v61 = vor.u32 %v1770_v59, %v1620_v60  ;;  %v1367_v1 = vor.u32 %v1710_v63, %v1366_v62  ;;  %v1766_v3 = vld [vmem:[#allocation8 + $0x2f8] sm:$0xf0]  ;;  %v1707_v4 = vld [vmem:[#allocation8 + $0x124] sm:$0xf]  ;;  %v1368_v5 = vld [vmem:[#allocation8 + $0x13c] sm:$0xf0] }
  0x34   :  { %907 = vmatpush.bf16.msra.mxu2 %v1251_v32  ;;  %v1591_v6 = vor.u32 %v1766_v3, %v1590_v0  ;;  %v1371_v7 = vor.u32 %v1707_v4, %v1368_v5  ;;  %v1763_v8 = vld [vmem:[#allocation8 + $0x2e4] sm:$0xf]  ;;  %v1592_v9 = vld [vmem:[#allocation8 + $0x2fc] sm:$0xf0]  ;;  %v1338_v11 = vld [vmem:[#allocation8 + $0xe8] sm:$0xf] }
  0x35   :  { %v1595_v10 = vor.u32 %v1763_v8, %v1592_v9  ;;  %v1703_v12 = vld [vmem:[#allocation8 + $0x100] sm:$0xf0]  ;;  %v1562_v13 = vld [vmem:[#allocation8 + $0x2a8] sm:$0xf]  ;;  %v1700_v16 = vld [vmem:[#allocation8 + $0xec] sm:$0xf] }
  0x36   :  { %920 = vmatpush.bf16.msra.mxu3 %v1475_v33  ;;  %v1339_v14 = vor.u32 %v1703_v12, %v1338_v11  ;;  %v1759_v15 = vld [vmem:[#allocation8 + $0x2c0] sm:$0xf0]  ;;  %v1340_v17 = vld [vmem:[#allocation8 + $0x104] sm:$0xf0]  ;;  %v1756_v19 = vld [vmem:[#allocation8 + $0x2ac] sm:$0xf] }
  0x37   :  { %882 = vmatpush.bf16.msra.mxu0 %v1219_v35  ;;  %895 = vmatpush.bf16.msra.mxu1 %v1443_v36  ;;  %v1563_v2 = vor.u32 %v1759_v15, %v1562_v13  ;;  %v1343_v18 = vor.u32 %v1700_v16, %v1340_v17  ;;  %v1564_v20 = vld [vmem:[#allocation8 + $0x2c4] sm:$0xf0]  ;;  %v1310_v22 = vld [vmem:[#allocation8 + $0xb0] sm:$0xf]  ;;  %v1696_v23 = vld [vmem:[#allocation8 + $0xc8] sm:$0xf0] }
  0x38   :  { %908 = vmatpush.bf16.msra.mxu2 %v1223_v42  ;;  %v1567_v21 = vor.u32 %v1756_v19, %v1564_v20  ;;  %v1311_v24 = vor.u32 %v1696_v23, %v1310_v22  ;;  %v1534_v25 = vld [vmem:[#allocation8 + $0x270] sm:$0xf]  ;;  %v1752_v26 = vld [vmem:[#allocation8 + $0x288] sm:$0xf0]  ;;  %v1693_v27 = vld [vmem:[#allocation8 + $0xb4] sm:$0xf] }
  0x39   :  { %v1535_v28 = vor.u32 %v1752_v26, %v1534_v25  ;;  %v1312_v29 = vld [vmem:[#allocation8 + $0xcc] sm:$0xf0]  ;;  %v1749_v30 = vld [vmem:[#allocation8 + $0x274] sm:$0xf]  ;;  %v1282_v34 = vld [vmem:[#allocation8 + $0x78] sm:$0xf] }
  0x3a   :  { %921 = vmatpush.bf16.msra.mxu3 %v1447_v43  ;;  %v1536_v31 = vld [vmem:[#allocation8 + $0x28c] sm:$0xf0]  ;;  %v1315_v32 = vor.u32 %v1693_v27, %v1312_v29  ;;  %v1689_v35 = vld [vmem:[#allocation8 + $0x90] sm:$0xf0]  ;;  %v1506_v36 = vld [vmem:[#allocation8 + $0x238] sm:$0xf] }
  0x3b   :  { %927 = vmatpush.bf16.msrb.mxu0 %v1423_v40  ;;  %940 = vmatpush.bf16.msrb.mxu1 %v1647_v41  ;;  %v1539_v33 = vor.u32 %v1749_v30, %v1536_v31  ;;  %v1283_v37 = vor.u32 %v1689_v35, %v1282_v34  ;;  %v1745_v38 = vld [vmem:[#allocation8 + $0x250] sm:$0xf0]  ;;  %v1686_v39 = vld [vmem:[#allocation8 + $0x7c] sm:$0xf]  ;;  %v1284_v40 = vld [vmem:[#allocation8 + $0x94] sm:$0xf0] }
  0x3c   :  { %953 = vmatpush.bf16.msrb.mxu2 %v1427_v47  ;;  %v1507_v41 = vor.u32 %v1745_v38, %v1506_v36  ;;  %v1287_v42 = vor.u32 %v1686_v39, %v1284_v40  ;;  %v1742_v43 = vld [vmem:[#allocation8 + $0x23c] sm:$0xf]  ;;  %v1508_v44 = vld [vmem:[#allocation8 + $0x254] sm:$0xf0]  ;;  %v1254_v46 = vld [vmem:[#allocation8 + $0x40] sm:$0xf] }
  0x3d   :  { %v1511_v45 = vor.u32 %v1742_v43, %v1508_v44  ;;  %v1682_v47 = vld [vmem:[#allocation8 + $0x58] sm:$0xf0]  ;;  %v1478_v48 = vld [vmem:[#allocation8 + $0x200] sm:$0xf]  ;;  %v1679_v51 = vld [vmem:[#allocation8 + $0x44] sm:$0xf] }
  0x3e   :  { %966 = vmatpush.bf16.msrb.mxu3 %v1651_v49  ;;  %v1255_v49 = vor.u32 %v1682_v47, %v1254_v46  ;;  %v1738_v50 = vld [vmem:[#allocation8 + $0x218] sm:$0xf0]  ;;  %v1256_v52 = vld [vmem:[#allocation8 + $0x5c] sm:$0xf0]  ;;  %v1735_v55 = vld [vmem:[#allocation8 + $0x204] sm:$0xf] }
  0x3f   :  { %928 = vmatpush.bf16.msrb.mxu0 %v1395_v53  ;;  %941 = vmatpush.bf16.msrb.mxu1 %v1619_v57  ;;  %v1479_v53 = vor.u32 %v1738_v50, %v1478_v48  ;;  %v1259_v54 = vor.u32 %v1679_v51, %v1256_v52  ;;  %v1480_v56 = vld [vmem:[#allocation8 + $0x21c] sm:$0xf0]  ;;  %v1675_v59 = vld [vmem:[#allocation8 + $0x20] sm:$0xf0]  ;;  %v1450_v60 = vld [vmem:[#allocation8 + $0x1c8] sm:$0xf] }
  0x40   :  { %954 = vmatpush.bf16.msrb.mxu2 %v1399_v58  ;;  %v1483_v57 = vor.u32 %v1735_v55, %v1480_v56  ;;  %v1226_v58 = vld [vmem:[#allocation8 + $0x8] sm:$0xf]  ;;  %v1731_v62 = vld [vmem:[#allocation8 + $0x1e0] sm:$0xf0]  ;;  %v1672_v63 = vld [vmem:[#allocation8 + $0xc] sm:$0xf] }
  0x41   :  { %v1228_v0 = vld [vmem:[#allocation8 + $0x24] sm:$0xf0]  ;;  %v1728_v4 = vld [vmem:[#allocation8 + $0x1cc] sm:$0xf]  ;;  %v93_v8 = vld [vmem:[#allocation5 + $0x8] sm:$0x1f] }
  0x42   :  { %967 = vmatpush.bf16.msrb.mxu3 %v1623_v61  ;;  %v1227_v61 = vor.u32 %v1675_v59, %v1226_v58  ;;  %v1231_v3 = vor.u32 %v1672_v63, %v1228_v0  ;;  %v1452_v5 = vld [vmem:[#allocation8 + $0x1e4] sm:$0xf0]  ;;  %v94_v11 = vld [vmem:[#allocation7] sm:$0x3]  ;;  %v106_v13 = vperm.slane %v93_v8, 0  ;;  %v126_v20 = vperm.slane %v93_v8, 2 }
  0x43   :  { %929 = vmatpush.bf16.msrb.mxu0 %v1367_v1  ;;  %942 = vmatpush.bf16.msrb.mxu1 %v1591_v6  ;;  %v1451_v1 = vor.u32 %v1731_v62, %v1450_v60  ;;  %v1455_v6 = vor.u32 %v1728_v4, %v1452_v5  ;;  %v97_v15 = vperm.slane %v94_v11, 1  ;;  %v136_v22 = vperm.slane %v93_v8, 3  ;;  %v1430_v46 = vld [vmem:[#allocation8 + $0x198] sm:$0xf]  ;;  %v1725_v47 = vld [vmem:[#allocation8 + $0x1b0] sm:$0xf0] }
  0x44   :  { %955 = vmatpush.bf16.msrb.mxu2 %v1371_v7  ;;  %v92_v7 = vld [vmem:[#allocation5] sm:$0x1f]  ;;  %v146_v26 = vperm.slane %v93_v8, 4  ;;  %v1654_v48 = vld [vmem:[#allocation8 + $0x358] sm:$0xf]  ;;  %s1998_s2 = smov [#allocation11]  }
  0x45   :  { %v105_v12 = vperm.slane %v92_v7, 0  ;;  %v125_v19 = vperm.slane %v92_v7, 2  ;;  %v145_v25 = vperm.slane %v92_v7, 4  ;;  %v1722_v50 = vld [vmem:[#allocation8 + $0x19c] sm:$0xf]  ;;  %s1202_s4 = sshll.u32 %s1998_s2, 4  ;;  %s1203_s4 = int_to_ptr.vmem [resolvable:$true] %s1202_s4 }
  0x46   :  { %968 = vmatpush.bf16.msrb.mxu3 %v1595_v10  ;;  %v1432_v51 = vld [vmem:[#allocation8 + $0x1b4] sm:$0xf0]  ;;  %v1778_v52 = vld [vmem:[#allocation8 + $0x35c] sm:$0xf]  ;;  %v1402_v59 = vld [vmem:[#allocation8 + $0x160] sm:$0xf] }
  0x47   :  { %930 = vmatpush.bf16.msrb.mxu0 %v1339_v14  ;;  %943 = vmatpush.bf16.msrb.mxu1 %v1563_v2  ;;  %v96_v14 = vperm.slane %v94_v11, 0  ;;  %v115_v2 = vperm.slane %v92_v7, 1  ;;  %v1718_v60 = vld [vmem:[#allocation8 + $0x178] sm:$0xf0]  ;;  %v1435_v62 = vor.u32 %v1722_v50, %v1432_v51  ;;  %v1626_v0 = vld [vmem:[#allocation8 + $0x320] sm:$0xf] }
  0x48   :  { %956 = vmatpush.bf16.msrb.mxu2 %v1343_v18  ;;  %v116_v18 = vperm.slane %v93_v8, 1  ;;  %v1404_v4 = vld [vmem:[#allocation8 + $0x17c] sm:$0xf0]  ;;  %v1771_v5 = vld [vmem:[#allocation8 + $0x324] sm:$0xf]  ;;  %s1204_s19 = sshll.u32 %s2081_s5, 4  ;;  %s1205_s19 = int_to_ptr.hbm [resolvable:$true] %s1204_s19 }
  0x49   :  { %v1687_v50 = vld [vmem:[#allocation8 + $0x84] sm:$0xf]  ;;  %v1292_v51 = vld [vmem:[#allocation8 + $0x9c] sm:$0xf0] }
  0x4a   :  { %969 = vmatpush.bf16.msrb.mxu3 %v1567_v21  ;;  %v135_v21 = vperm.slane %v92_v7, 3  ;;  %v1403_v7 = vor.u32 %v1718_v60, %v1402_v59  ;;  %v1295_v59 = vor.u32 %v1687_v50, %v1292_v51  ;;  %v1298_v50 = vld [vmem:[#allocation8 + $0x88] sm:$0xf]  ;;  %v1691_v51 = vld [vmem:[#allocation8 + $0xa0] sm:$0xf0] }
  0x4b   :  { %931 = vmatpush.bf16.msrb.mxu0 %v1311_v24  ;;  %944 = vmatpush.bf16.msrb.mxu1 %v1535_v28 }
  0x4c   :  { %957 = vmatpush.bf16.msrb.mxu2 %v1315_v32 }
  0x4e   :  { %970 = vmatpush.bf16.msrb.mxu3 %v1539_v33 }
  0x4f   :  { %932 = vmatpush.bf16.msrb.mxu0 %v1283_v37  ;;  %945 = vmatpush.bf16.msrb.mxu1 %v1507_v41 }
  0x50   :  { %958 = vmatpush.bf16.msrb.mxu2 %v1287_v42 }
  0x52   :  { %971 = vmatpush.bf16.msrb.mxu3 %v1511_v45 }
  0x53   :  { %933 = vmatpush.bf16.msrb.mxu0 %v1255_v49  ;;  %946 = vmatpush.bf16.msrb.mxu1 %v1479_v53  ;;  %v1781_v49 = vld [vmem:[#allocation8 + $0x370] sm:$0xf0]  ;;  %v1656_v53 = vld [vmem:[#allocation8 + $0x374] sm:$0xf0] }
  0x54   :  { %959 = vmatpush.bf16.msrb.mxu2 %v1259_v54  ;;  %v1655_v58 = vor.u32 %v1781_v49, %v1654_v48  ;;  %v1659_v63 = vor.u32 %v1778_v52, %v1656_v53  ;;  %v1514_v48 = vld [vmem:[#allocation8 + $0x240] sm:$0xf]  ;;  %v1746_v49 = vld [vmem:[#allocation8 + $0x258] sm:$0xf0]  ;;  %v1743_v52 = vld [vmem:[#allocation8 + $0x244] sm:$0xf] }
  0x55   :  { %v1516_v53 = vld [vmem:[#allocation8 + $0x25c] sm:$0xf0] }
  0x56   :  { %972 = vmatpush.bf16.msrb.mxu3 %v1483_v57  ;;  %v1431_v57 = vor.u32 %v1725_v47, %v1430_v46  ;;  %v1519_v60 = vor.u32 %v1743_v52, %v1516_v53  ;;  %v1522_v52 = vld [vmem:[#allocation8 + $0x248] sm:$0xf]  ;;  %v1747_v53 = vld [vmem:[#allocation8 + $0x260] sm:$0xf0] }
  0x57   :  { %934 = vmatpush.bf16.msrb.mxu0 %v1227_v61  ;;  %947 = vmatpush.bf16.msrb.mxu1 %v1451_v1  ;;  %v1774_v1 = vld [vmem:[#allocation8 + $0x338] sm:$0xf0] }
  0x58   :  { %960 = vmatpush.bf16.msrb.mxu2 %v1231_v3  ;;  %v1715_v3 = vld [vmem:[#allocation8 + $0x164] sm:$0xf]  ;;  %v1627_v8 = vor.u32 %v1774_v1, %v1626_v0  ;;  %v1680_v0 = vld [vmem:[#allocation8 + $0x4c] sm:$0xf]  ;;  %v1264_v1 = vld [vmem:[#allocation8 + $0x64] sm:$0xf0] }
  0x59   :  { %v1407_v11 = vor.u32 %v1715_v3, %v1404_v4  ;;  %v1736_v3 = vld [vmem:[#allocation8 + $0x20c] sm:$0xf]  ;;  %v1488_v4 = vld [vmem:[#allocation8 + $0x224] sm:$0xf0] }
  0x5a   :  { %973 = vmatpush.bf16.msrb.mxu3 %v1455_v6  ;;  %v1628_v6 = vld [vmem:[#allocation8 + $0x33c] sm:$0xf0] }
  0x73   :  { %v143_v33 = vpop.permute.xlu2 %142 }
  0x74   :  { %v147_v40 = vmul.f32 %v145_v25, %v143_v33  ;;  %v148_v41 = vmul.f32 %v146_v26, %v143_v33  ;;  %v1760_v25 = vld [vmem:[#allocation8 + $0x2c8] sm:$0xf0]  ;;  %v1701_v26 = vld [vmem:[#allocation8 + $0xf4] sm:$0xf] }
  0x75   :  { %v1697_v33 = vld [vmem:[#allocation8 + $0xd0] sm:$0xf0] }
  0x8a   :  { %v103_v9 = vpop.permute.xlu0 %102 }
  0x8b   :  { %v123_v10 = vpop.permute.xlu1 %122  ;;  %v107_v16 = vmul.f32 %v105_v12, %v103_v9  ;;  %v108_v17 = vmul.f32 %v106_v13, %v103_v9  ;;  %v1374_v9 = vld [vmem:[#allocation8 + $0x128] sm:$0xf]  ;;  %v1631_v12 = vor.u32 %v1771_v5, %v1628_v6 }
  0x8c   :  { %v127_v31 = vmul.f32 %v125_v19, %v123_v10  ;;  %v128_v32 = vmul.f32 %v126_v20, %v123_v10  ;;  %v1711_v10 = vld [vmem:[#allocation8 + $0x140] sm:$0xf0]  ;;  %v1598_v13 = vld [vmem:[#allocation8 + $0x2e8] sm:$0xf]  ;;  %v1346_v20 = vld [vmem:[#allocation8 + $0xf0] sm:$0xf] }
  0x8d   :  { %v109_v27 = vadd.f32 %v107_v16, %v96_v14  ;;  %v110_v28 = vadd.f32 %v108_v17, %v97_v15  ;;  %v1767_v14 = vld [vmem:[#allocation8 + $0x300] sm:$0xf0]  ;;  %v1708_v15 = vld [vmem:[#allocation8 + $0x12c] sm:$0xf]  ;;  %v1376_v16 = vld [vmem:[#allocation8 + $0x144] sm:$0xf0] }
  0x8e   :  { %v1764_v17 = vld [vmem:[#allocation8 + $0x2ec] sm:$0xf]  ;;  %v1599_v19 = vor.u32 %v1767_v14, %v1598_v13  ;;  %v1673_v13 = vld [vmem:[#allocation8 + $0x14] sm:$0xf]  ;;  %v1236_v14 = vld [vmem:[#allocation8 + $0x2c] sm:$0xf0] }
  0x93   :  { %v113_v23 = vpop.permute.xlu0 %112 }
  0x94   :  { %v133_v24 = vpop.permute.xlu1 %132  ;;  %v117_v29 = vmul.f32 %v115_v2, %v113_v23  ;;  %v118_v30 = vmul.f32 %v116_v18, %v113_v23  ;;  %v1600_v2 = vld [vmem:[#allocation8 + $0x304] sm:$0xf0]  ;;  %v1375_v18 = vor.u32 %v1711_v10, %v1374_v9  ;;  %v1458_v9 = vld [vmem:[#allocation8 + $0x1d0] sm:$0xf]  ;;  %v1267_v10 = vor.u32 %v1680_v0, %v1264_v1  ;;  %v1242_v0 = vld [vmem:[#allocation8 + $0x18] sm:$0xf] }
  0x95   :  { %v137_v36 = vmul.f32 %v135_v21, %v133_v24  ;;  %v138_v37 = vmul.f32 %v136_v22, %v133_v24  ;;  %v1704_v21 = vld [vmem:[#allocation8 + $0x108] sm:$0xf0]  ;;  %v1379_v22 = vor.u32 %v1708_v15, %v1376_v16  ;;  %v1603_v23 = vor.u32 %v1764_v17, %v1600_v2  ;;  %v1570_v24 = vld [vmem:[#allocation8 + $0x2b0] sm:$0xf]  ;;  %v1729_v15 = vld [vmem:[#allocation8 + $0x1d4] sm:$0xf] }
  0x96   :  { %v119_v34 = vadd.f32 %v117_v29, %v109_v27  ;;  %v120_v35 = vadd.f32 %v118_v30, %v110_v28  ;;  %v1348_v27 = vld [vmem:[#allocation8 + $0x10c] sm:$0xf0]  ;;  %v1757_v28 = vld [vmem:[#allocation8 + $0x2b4] sm:$0xf]  ;;  %v1347_v30 = vor.u32 %v1704_v21, %v1346_v20  ;;  %v1438_v17 = vld [vmem:[#allocation8 + $0x1a0] sm:$0xf] }
  0x97   :  { %v1572_v29 = vld [vmem:[#allocation8 + $0x2cc] sm:$0xf0]  ;;  %v1726_v2 = vld [vmem:[#allocation8 + $0x1b8] sm:$0xf0]  ;;  %v1677_v1 = vld [vmem:[#allocation8 + $0x30] sm:$0xf0] }
  0x98   :  { %v129_v38 = vadd.f32 %v127_v31, %v119_v34  ;;  %v130_v39 = vadd.f32 %v128_v32, %v120_v35  ;;  %v1571_v31 = vor.u32 %v1760_v25, %v1570_v24  ;;  %v1318_v32 = vld [vmem:[#allocation8 + $0xb8] sm:$0xf]  ;;  %v1351_v34 = vor.u32 %v1701_v26, %v1348_v27  ;;  %v1460_v16 = vld [vmem:[#allocation8 + $0x1ec] sm:$0xf0]  ;;  %v1410_v26 = vld [vmem:[#allocation8 + $0x168] sm:$0xf] }
  0x99   :  { %v1575_v35 = vor.u32 %v1757_v28, %v1572_v29  ;;  %v1439_v24 = vor.u32 %v1726_v2, %v1438_v17  ;;  %v1719_v27 = vld [vmem:[#allocation8 + $0x180] sm:$0xf0]  ;;  %v1634_v28 = vld [vmem:[#allocation8 + $0x328] sm:$0xf] }
  0x9a   :  { %v139_v42 = vadd.f32 %v137_v36, %v129_v38  ;;  %v140_v43 = vadd.f32 %v138_v37, %v130_v39  ;;  %v1542_v36 = vld [vmem:[#allocation8 + $0x278] sm:$0xf]  ;;  %v1753_v37 = vld [vmem:[#allocation8 + $0x290] sm:$0xf0]  ;;  %v1694_v38 = vld [vmem:[#allocation8 + $0xbc] sm:$0xf] }
  0x9b   :  { %v1320_v39 = vld [vmem:[#allocation8 + $0xd4] sm:$0xf0]  ;;  %v1775_v29 = vld [vmem:[#allocation8 + $0x340] sm:$0xf0] }
  0x9c   :  { %v149_v44 = vadd.f32 %v147_v40, %v139_v42  ;;  %v150_v45 = vadd.f32 %v148_v41, %v140_v43  ;;  %v1750_v40 = vld [vmem:[#allocation8 + $0x27c] sm:$0xf]  ;;  %v1544_v41 = vld [vmem:[#allocation8 + $0x294] sm:$0xf0]  ;;  %v1319_v42 = vor.u32 %v1697_v33, %v1318_v32  ;;  %v1543_v43 = vor.u32 %v1753_v37, %v1542_v36  ;;  %v1382_v32 = vld [vmem:[#allocation8 + $0x130] sm:$0xf] }
  0x9d   :  { %v1323_v46 = vor.u32 %v1694_v38, %v1320_v39  ;;  %v1547_v47 = vor.u32 %v1750_v40, %v1544_v41  ;;  %v1712_v33 = vld [vmem:[#allocation8 + $0x148] sm:$0xf0]  ;;  %v1354_v38 = vld [vmem:[#allocation8 + $0xf8] sm:$0xf]  ;;  %v1705_v39 = vld [vmem:[#allocation8 + $0x110] sm:$0xf0] }
  0x9e   :  { %1802 = vtanh.f32 %v149_v44  ;;  %v1290_v44 = vld [vmem:[#allocation8 + $0x80] sm:$0xf]  ;;  %v1383_v36 = vor.u32 %v1712_v33, %v1382_v32  ;;  %v1578_v40 = vld [vmem:[#allocation8 + $0x2b8] sm:$0xf]  ;;  %v1761_v41 = vld [vmem:[#allocation8 + $0x2d0] sm:$0xf0] }
  0x9f   :  { %1804 = vtanh.f32 %v150_v45  ;;  %v1690_v45 = vld [vmem:[#allocation8 + $0x98] sm:$0xf0] }
  0xa4   :  { %v1803_v54 = vpop.eup %1802 }
  0xa5   :  { %v1805_v55 = vpop.eup %1804  ;;  %v2046_v56 = vpack.c.bf16 %v1803_v54, %v1803_v54  ;;  %v1291_v54 = vor.u32 %v1690_v45, %v1290_v44  ;;  %v1326_v44 = vld [vmem:[#allocation8 + $0xc0] sm:$0xf]  ;;  %v1698_v45 = vld [vmem:[#allocation8 + $0xd8] sm:$0xf0] }
  0xa6   :  { %v2048_v61 = vpack.c.bf16 %v1805_v55, %v1805_v55  ;;  %v1515_v55 = vor.u32 %v1746_v49, %v1514_v48  ;;  %v1327_v48 = vor.u32 %v1698_v45, %v1326_v44 }
  0xa7   :  { %883 = vmatmul.bf16.vlgmr.msra.gmra.mxu0 %v2046_v56  ;;  %909 = vmatmul.bf16.vlgmr.msra.gmra.mxu2 %v2046_v56 }
  0xa8   :  { %896 = vmatmul.bf16.vlgmr.msra.gmra.mxu1 %v2048_v61  ;;  %922 = vmatmul.bf16.vlgmr.msra.gmra.mxu3 %v2048_v61 }
  0xa9   :  { %979 = vmatpush.bf16.msra.mxu0 %v1431_v57  ;;  %992 = vmatpush.bf16.msra.mxu1 %v1655_v58  ;;  %v1262_v57 = vld [vmem:[#allocation8 + $0x48] sm:$0xf]  ;;  %v1683_v58 = vld [vmem:[#allocation8 + $0x60] sm:$0xf0] }
  0xaa   :  { %1005 = vmatpush.bf16.msra.mxu2 %v1435_v62  ;;  %1018 = vmatpush.bf16.msra.mxu3 %v1659_v63  ;;  %v1486_v62 = vld [vmem:[#allocation8 + $0x208] sm:$0xf]  ;;  %v1739_v63 = vld [vmem:[#allocation8 + $0x220] sm:$0xf0]  ;;  %v1263_v5 = vor.u32 %v1683_v58, %v1262_v57  ;;  %v1270_v57 = vld [vmem:[#allocation8 + $0x50] sm:$0xf] }
  0xab   :  { %v1487_v6 = vor.u32 %v1739_v63, %v1486_v62  ;;  %v1684_v58 = vld [vmem:[#allocation8 + $0x68] sm:$0xf0] }
  0xac   :  { %v1271_v62 = vor.u32 %v1684_v58, %v1270_v57 }
  0xad   :  { %980 = vmatpush.bf16.msra.mxu0 %v1403_v7  ;;  %993 = vmatpush.bf16.msra.mxu1 %v1627_v8  ;;  %v1234_v7 = vld [vmem:[#allocation8 + $0x10] sm:$0xf]  ;;  %v1676_v8 = vld [vmem:[#allocation8 + $0x28] sm:$0xf0] }
  0xae   :  { %1006 = vmatpush.bf16.msra.mxu2 %v1407_v11  ;;  %1019 = vmatpush.bf16.msra.mxu3 %v1631_v12  ;;  %v1491_v11 = vor.u32 %v1736_v3, %v1488_v4  ;;  %v1732_v12 = vld [vmem:[#allocation8 + $0x1e8] sm:$0xf0]  ;;  %v1235_v20 = vor.u32 %v1676_v8, %v1234_v7  ;;  %v1466_v3 = vld [vmem:[#allocation8 + $0x1d8] sm:$0xf]  ;;  %v1733_v4 = vld [vmem:[#allocation8 + $0x1f0] sm:$0xf0] }
  0xaf   :  { %v1459_v21 = vor.u32 %v1732_v12, %v1458_v9  ;;  %v2064_v7 = vld [vmem:[#allocation10] sm:$0xff] }
  0xb0   :  { %v285_v8 = vperm.slane %v2064_v7, 0 }
  0xb1   :  { %981 = vmatpush.bf16.msra.mxu0 %v1375_v18  ;;  %994 = vmatpush.bf16.msra.mxu1 %v1599_v19  ;;  %v1662_v18 = vld [vmem:[#allocation8 + $0x360] sm:$0xf]  ;;  %v1782_v19 = vld [vmem:[#allocation8 + $0x378] sm:$0xf0] }
  0xb2   :  { %1007 = vmatpush.bf16.msra.mxu2 %v1379_v22  ;;  %1020 = vmatpush.bf16.msra.mxu3 %v1603_v23  ;;  %v1239_v22 = vor.u32 %v1673_v13, %v1236_v14  ;;  %v1463_v23 = vor.u32 %v1729_v15, %v1460_v16  ;;  %v1663_v25 = vor.u32 %v1782_v19, %v1662_v18  ;;  %v286_v13 = vperm.slane %v2064_v7, 1 }
  0xb5   :  { %982 = vmatpush.bf16.msra.mxu0 %v1347_v30  ;;  %995 = vmatpush.bf16.msra.mxu1 %v1571_v31  ;;  %v1411_v30 = vor.u32 %v1719_v27, %v1410_v26  ;;  %v1635_v31 = vor.u32 %v1775_v29, %v1634_v28  ;;  %v288_v29 = vperm.slane %v2064_v7, 3 }
  0xb6   :  { %1008 = vmatpush.bf16.msra.mxu2 %v1351_v34  ;;  %1021 = vmatpush.bf16.msra.mxu3 %v1575_v35  ;;  %v1606_v34 = vld [vmem:[#allocation8 + $0x2f0] sm:$0xf]  ;;  %v1768_v35 = vld [vmem:[#allocation8 + $0x308] sm:$0xf0] }
  0xb7   :  { %935 = vmatmul.bf16.vlgmr.msrb.gmra.mxu0 %v2046_v56  ;;  %961 = vmatmul.bf16.vlgmr.msrb.gmra.mxu2 %v2046_v56  ;;  %v1607_v37 = vor.u32 %v1768_v35, %v1606_v34 }
  0xb8   :  { %948 = vmatmul.bf16.vlgmr.msrb.gmra.mxu1 %v2048_v61  ;;  %974 = vmatmul.bf16.vlgmr.msrb.gmra.mxu3 %v2048_v61 }
  0xb9   :  { %983 = vmatpush.bf16.msra.mxu0 %v1319_v42  ;;  %996 = vmatpush.bf16.msra.mxu1 %v1543_v43  ;;  %v1355_v42 = vor.u32 %v1705_v39, %v1354_v38  ;;  %v1579_v43 = vor.u32 %v1761_v41, %v1578_v40 }
  0xba   :  { %1009 = vmatpush.bf16.msra.mxu2 %v1323_v46  ;;  %1022 = vmatpush.bf16.msra.mxu3 %v1547_v47  ;;  %v1550_v46 = vld [vmem:[#allocation8 + $0x280] sm:$0xf]  ;;  %v1754_v47 = vld [vmem:[#allocation8 + $0x298] sm:$0xf0] }
  0xbb   :  { %v1551_v49 = vor.u32 %v1754_v47, %v1550_v46 }
  0xbd   :  { %984 = vmatpush.bf16.msra.mxu0 %v1291_v54  ;;  %997 = vmatpush.bf16.msra.mxu1 %v1515_v55  ;;  %v1299_v54 = vor.u32 %v1691_v51, %v1298_v50  ;;  %v1523_v55 = vor.u32 %v1747_v53, %v1522_v52  ;;  %v289_v52 = vperm.slane %v2064_v7, 4 }
  0xbe   :  { %1010 = vmatpush.bf16.msra.mxu2 %v1295_v59  ;;  %1023 = vmatpush.bf16.msra.mxu3 %v1519_v60  ;;  %v1494_v59 = vld [vmem:[#allocation8 + $0x210] sm:$0xf]  ;;  %v1740_v60 = vld [vmem:[#allocation8 + $0x228] sm:$0xf0] }
  0xbf   :  { %v1495_v63 = vor.u32 %v1740_v60, %v1494_v59 }
  0xc1   :  { %985 = vmatpush.bf16.msra.mxu0 %v1263_v5  ;;  %998 = vmatpush.bf16.msra.mxu1 %v1487_v6  ;;  %v1243_v5 = vor.u32 %v1677_v1, %v1242_v0  ;;  %v1467_v6 = vor.u32 %v1733_v4, %v1466_v3 }
  0xc2   :  { %1011 = vmatpush.bf16.msra.mxu2 %v1267_v10  ;;  %1024 = vmatpush.bf16.msra.mxu3 %v1491_v11 }
  0xc5   :  { %986 = vmatpush.bf16.msra.mxu0 %v1235_v20  ;;  %999 = vmatpush.bf16.msra.mxu1 %v1459_v21  ;;  %v287_v20 = vperm.slane %v2064_v7, 2 }
  0xc6   :  { %1012 = vmatpush.bf16.msra.mxu2 %v1239_v22  ;;  %1025 = vmatpush.bf16.msra.mxu3 %v1463_v23 }
  0xc8   :  { %987 = vmatmul.bf16.vlgmr.msra.gmra.mxu0 %v2046_v56  ;;  %1000 = vmatmul.bf16.vlgmr.msra.gmra.mxu1 %v2048_v61 }
  0xc9   :  { %1031 = vmatpush.bf16.msrb.mxu0 %v1439_v24  ;;  %1044 = vmatpush.bf16.msrb.mxu1 %v1663_v25 }
  0xca   :  { %1013 = vmatmul.bf16.vlgmr.msra.gmra.mxu2 %v2046_v56  ;;  %1026 = vmatmul.bf16.vlgmr.msra.gmra.mxu3 %v2048_v61 }
  0xcd   :  { %1032 = vmatpush.bf16.msrb.mxu0 %v1411_v30  ;;  %1045 = vmatpush.bf16.msrb.mxu1 %v1635_v31 }
  0xd1   :  { %1033 = vmatpush.bf16.msrb.mxu0 %v1383_v36  ;;  %1046 = vmatpush.bf16.msrb.mxu1 %v1607_v37 }
  0xd5   :  { %1034 = vmatpush.bf16.msrb.mxu0 %v1355_v42  ;;  %1047 = vmatpush.bf16.msrb.mxu1 %v1579_v43 }
  0xd9   :  { %1035 = vmatpush.bf16.msrb.mxu0 %v1327_v48  ;;  %1048 = vmatpush.bf16.msrb.mxu1 %v1551_v49 }
  0xdd   :  { %1036 = vmatpush.bf16.msrb.mxu0 %v1299_v54  ;;  %1049 = vmatpush.bf16.msrb.mxu1 %v1523_v55 }
  0xe1   :  { %1037 = vmatpush.bf16.msrb.mxu0 %v1271_v62  ;;  %1050 = vmatpush.bf16.msrb.mxu1 %v1495_v63 }
  0xe5   :  { %1038 = vmatpush.bf16.msrb.mxu0 %v1243_v5  ;;  %1051 = vmatpush.bf16.msrb.mxu1 %v1467_v6 }
  0xe8   :  { %1039 = vmatmul.bf16.vlgmr.msrb.gmra.mxu0 %v2046_v56  ;;  %1052 = vmatmul.bf16.vlgmr.msrb.gmra.mxu1 %v2048_v61 }
 0x124   :  { %v884_v9 = vpop.f32.mrf.mxu0 }
 0x125   :  { %v885_v10 = vadd.f32 %v884_v9, %v285_v8  ;;  %v897_v11 = vpop.f32.mrf.mxu1  ;;  %v290_v9 = vperm.slane %v2064_v7, 5 }
 0x127   :  { %v898_v12 = vadd.f32 %v897_v11, %v885_v10 }
 0x129   :  { %v1664_v14 = vmul.f32 -1.442695, %v898_v12 }
 0x12a   :  { %v910_v15 = vpop.f32.mrf.mxu2 }
 0x12b   :  { %1806 = vpow2.f32 %v1664_v14  ;;  %v911_v16 = vadd.f32 %v910_v15, %v286_v13  ;;  %v923_v17 = vpop.f32.mrf.mxu3 }
 0x12c   :  { %v886_v2 = vpop.f32.mrf.mxu0 }
 0x12d   :  { %v924_v18 = vadd.f32 %v923_v17, %v911_v16  ;;  %v899_v56 = vpop.f32.mrf.mxu1 }
 0x12f   :  { %v1665_v19 = vmul.f32 -1.442695, %v924_v18 }
 0x131   :  { %v1807_v61 = vpop.eup %1806  ;;  %1808 = vpow2.f32 %v1665_v19 }
 0x132   :  { %v1078_v21 = vadd.f32 1.0, %v1807_v61  ;;  %v912_v22 = vpop.f32.mrf.mxu2 }
 0x133   :  { %v925_v23 = vpop.f32.mrf.mxu3 }
 0x134   :  { %1810 = vrcp.f32 %v1078_v21  ;;  %v936_v24 = vpop.f32.mrf.mxu0  ;;  %v1096_v41 = vand.u32 2147483648, %v1078_v21  ;;  %v1094_v43 = vand.u32 2147483647, %v1078_v21  ;;  %vm1090_vm1 = vweird.f32 %v1078_v21 }
 0x135   :  { %v937_v25 = vadd.f32 %v936_v24, %v287_v20  ;;  %v949_v26 = vpop.f32.mrf.mxu1 }
 0x136   :  { %v1097_v49 = vor.u32 1.1754944e-38, %v1096_v41  ;;  %vm1095_vm3 = vcmp.eq.f32.partialorder %v1094_v43, 8.507059e+37 }
 0x137   :  { %v1809_v27 = vpop.eup %1808  ;;  %v950_v28 = vadd.f32 %v949_v26, %v937_v25 }
 0x138   :  { %v1079_v30 = vadd.f32 1.0, %v1809_v27 }
 0x139   :  { %v1666_v31 = vmul.f32 -1.442695, %v950_v28 }
 0x13a   :  { %v1811_v32 = vpop.eup %1810  ;;  %1812 = vrcp.f32 %v1079_v30  ;;  %v962_v33 = vpop.f32.mrf.mxu2  ;;  %v1111_v58 = vand.u32 2147483648, %v1079_v30  ;;  %v1109_v60 = vand.u32 2147483647, %v1079_v30  ;;  %vm1105_vm5 = vweird.f32 %v1079_v30 }
 0x13b   :  { %v1086_v34 = vmul.f32 %v1811_v32, %v1078_v21  ;;  %1814 = vpow2.f32 %v1666_v31  ;;  %v963_v35 = vadd.f32 %v962_v33, %v288_v29  ;;  %v975_v36 = vpop.f32.mrf.mxu3  ;;  %vm1091_vm0 = vweird.f32 %v1811_v32 }
 0x13c   :  { %v938_v37 = vpop.f32.mrf.mxu0  ;;  %vm1092_vm2 = vmor %vm1090_vm1, %vm1091_vm0  ;;  %v1112_v4 = vor.u32 1.1754944e-38, %v1111_v58  ;;  %vm1110_vm7 = vcmp.eq.f32.partialorder %v1109_v60, 8.507059e+37 }
 0x13d   :  { %v1087_v38 = vsub.f32 1.0, %v1086_v34  ;;  %v976_v39 = vadd.f32 %v975_v36, %v963_v35  ;;  %v951_v40 = vpop.f32.mrf.mxu1 }
 0x13f   :  { %v1088_v42 = vmul.f32 %v1811_v32, %v1087_v38  ;;  %v1667_v44 = vmul.f32 -1.442695, %v976_v39 }
 0x140   :  { %v1813_v45 = vpop.eup %1812 }
 0x141   :  { %v1815_v46 = vpop.eup %1814  ;;  %v1089_v47 = vadd.f32 %v1811_v32, %v1088_v42  ;;  %v1101_v48 = vmul.f32 %v1813_v45, %v1079_v30  ;;  %1816 = vpow2.f32 %v1667_v44  ;;  %vm1106_vm4 = vweird.f32 %v1813_v45 }
 0x142   :  { %v1080_v50 = vadd.f32 1.0, %v1815_v46  ;;  %v964_v51 = vpop.f32.mrf.mxu2  ;;  %vm1107_vm6 = vmor %vm1105_vm5, %vm1106_vm4  ;;  %v291_v46 = vperm.slane %v2064_v7, 6 }
 0x143   :  { %v1093_v53 = vsel %vm1092_vm2, %v1811_v32, %v1089_v47  ;;  %v1102_v54 = vsub.f32 1.0, %v1101_v48  ;;  %v977_v55 = vpop.f32.mrf.mxu3 }
 0x144   :  { %v1098_v57 = vsel %vm1095_vm3, %v1097_v49, %v1093_v53  ;;  %1818 = vrcp.f32 %v1080_v50  ;;  %v1126_v56 = vand.u32 2147483648, %v1080_v50  ;;  %v1124_v61 = vand.u32 2147483647, %v1080_v50 }
 0x145   :  { %1190 = vst [vmem:[#allocation11] sm:$0xff] %v1098_v57  ;;  %v1103_v59 = vmul.f32 %v1813_v45, %v1102_v54  ;;  %v988_v62 = vpop.f32.mrf.mxu0  ;;  %v1001_v63 = vpop.f32.mrf.mxu1  ;;  %vm1120_vm9 = vweird.f32 %v1080_v50 }
 0x146   :  { %v989_v0 = vadd.f32 %v988_v62, %v289_v52  ;;  %v1127_v25 = vor.u32 1.1754944e-38, %v1126_v56  ;;  %vm1125_vm11 = vcmp.eq.f32.partialorder %v1124_v61, 8.507059e+37 }
 0x147   :  { %v1817_v1 = vpop.eup %1816  ;;  %v1104_v3 = vadd.f32 %v1813_v45, %v1103_v59 }
 0x148   :  { %v1081_v5 = vadd.f32 1.0, %v1817_v1  ;;  %v1002_v6 = vadd.f32 %v1001_v63, %v989_v0 }
 0x149   :  { %v1108_v8 = vsel %vm1107_vm6, %v1813_v45, %v1104_v3 }
 0x14a   :  { %v1819_v10 = vpop.eup %1818  ;;  %v1113_v11 = vsel %vm1110_vm7, %v1112_v4, %v1108_v8  ;;  %1820 = vrcp.f32 %v1081_v5  ;;  %v1668_v13 = vmul.f32 -1.442695, %v1002_v6  ;;  %v1141_v30 = vand.u32 2147483648, %v1081_v5 }
 0x14b   :  { %1191 = vst [vmem:[#allocation11 + $0x8] sm:$0xff] %v1113_v11  ;;  %v1116_v12 = vmul.f32 %v1819_v10, %v1080_v50  ;;  %vm1121_vm8 = vweird.f32 %v1819_v10  ;;  %v1139_v35 = vand.u32 2147483647, %v1081_v5  ;;  %vm1135_vm13 = vweird.f32 %v1081_v5 }
 0x14c   :  { %1822 = vpow2.f32 %v1668_v13  ;;  %vm1122_vm10 = vmor %vm1120_vm9, %vm1121_vm8  ;;  %v1142_v37 = vor.u32 1.1754944e-38, %v1141_v30 }
 0x14d   :  { %v1014_v14 = vpop.f32.mrf.mxu2  ;;  %v1027_v15 = vpop.f32.mrf.mxu3  ;;  %v1117_v16 = vsub.f32 1.0, %v1116_v12  ;;  %vm1140_vm15 = vcmp.eq.f32.partialorder %v1139_v35, 8.507059e+37 }
 0x14e   :  { %v1015_v17 = vadd.f32 %v1014_v14, %v290_v9  ;;  %v990_v2 = vpop.f32.mrf.mxu0  ;;  %v1003_v18 = vpop.f32.mrf.mxu1 }
 0x14f   :  { %v1118_v19 = vmul.f32 %v1819_v10, %v1117_v16 }
 0x150   :  { %v1028_v20 = vadd.f32 %v1027_v15, %v1015_v17  ;;  %v1821_v21 = vpop.eup %1820 }
 0x151   :  { %v1119_v22 = vadd.f32 %v1819_v10, %v1118_v19  ;;  %v1131_v23 = vmul.f32 %v1821_v21, %v1081_v5  ;;  %vm1136_vm12 = vweird.f32 %v1821_v21 }
 0x152   :  { %v1669_v24 = vmul.f32 -1.442695, %v1028_v20  ;;  %v1823_v26 = vpop.eup %1822  ;;  %vm1137_vm14 = vmor %vm1135_vm13, %vm1136_vm12 }
 0x153   :  { %v1123_v27 = vsel %vm1122_vm10, %v1819_v10, %v1119_v22  ;;  %v1132_v28 = vsub.f32 1.0, %v1131_v23  ;;  %v1082_v31 = vadd.f32 1.0, %v1823_v26 }
 0x154   :  { %1824 = vpow2.f32 %v1669_v24  ;;  %v1128_v29 = vsel %vm1125_vm11, %v1127_v25, %v1123_v27 }
 0x155   :  { %v1016_v32 = vpop.f32.mrf.mxu2  ;;  %v1029_v33 = vpop.f32.mrf.mxu3  ;;  %1192 = vst [vmem:[#allocation11 + $0x10] sm:$0xff] %v1128_v29  ;;  %v1133_v34 = vmul.f32 %v1821_v21, %v1132_v28  ;;  %1826 = vrcp.f32 %v1082_v31  ;;  %v1156_v45 = vand.u32 2147483648, %v1082_v31  ;;  %v1154_v48 = vand.u32 2147483647, %v1082_v31 }
 0x156   :  { %vm1150_vm1 = vweird.f32 %v1082_v31 }
 0x157   :  { %v1134_v36 = vadd.f32 %v1821_v21, %v1133_v34  ;;  %v1157_v54 = vor.u32 1.1754944e-38, %v1156_v45  ;;  %vm1155_vm3 = vcmp.eq.f32.partialorder %v1154_v48, 8.507059e+37 }
 0x159   :  { %v1138_v39 = vsel %vm1137_vm14, %v1821_v21, %v1134_v36 }
 0x15a   :  { %v1825_v38 = vpop.eup %1824  ;;  %v1143_v40 = vsel %vm1140_vm15, %v1142_v37, %v1138_v39 }
 0x15b   :  { %v1083_v41 = vadd.f32 1.0, %v1825_v38  ;;  %1193 = vst [vmem:[#allocation11 + $0x18] sm:$0xff] %v1143_v40  ;;  %v1827_v42 = vpop.eup %1826 }
 0x15c   :  { %v1146_v43 = vmul.f32 %v1827_v42, %v1082_v31  ;;  %vm1151_vm0 = vweird.f32 %v1827_v42 }
 0x15d   :  { %1828 = vrcp.f32 %v1083_v41  ;;  %vm1152_vm2 = vmor %vm1150_vm1, %vm1151_vm0  ;;  %v1171_v60 = vand.u32 2147483648, %v1083_v41  ;;  %v1169_v63 = vand.u32 2147483647, %v1083_v41  ;;  %vm1165_vm5 = vweird.f32 %v1083_v41 }
 0x15e   :  { %v1147_v44 = vsub.f32 1.0, %v1146_v43 }
 0x15f   :  { %v1172_v3 = vor.u32 1.1754944e-38, %v1171_v60  ;;  %vm1170_vm7 = vcmp.eq.f32.partialorder %v1169_v63, 8.507059e+37 }
 0x160   :  { %v1148_v47 = vmul.f32 %v1827_v42, %v1147_v44 }
 0x162   :  { %v1149_v50 = vadd.f32 %v1827_v42, %v1148_v47 }
 0x163   :  { %v1829_v49 = vpop.eup %1828 }
 0x164   :  { %v1161_v51 = vmul.f32 %v1829_v49, %v1083_v41  ;;  %v1153_v57 = vsel %vm1152_vm2, %v1827_v42, %v1149_v50  ;;  %vm1166_vm4 = vweird.f32 %v1829_v49 }
 0x165   :  { %v1040_v52 = vpop.f32.mrf.mxu0  ;;  %v1053_v53 = vpop.f32.mrf.mxu1  ;;  %v1158_v59 = vsel %vm1155_vm3, %v1157_v54, %v1153_v57  ;;  %vm1167_vm6 = vmor %vm1165_vm5, %vm1166_vm4 }
 0x166   :  { %v1041_v55 = vadd.f32 %v1040_v52, %v291_v46  ;;  %v1162_v58 = vsub.f32 1.0, %v1161_v51  ;;  %1194 = vst [vmem:[#allocation11 + $0x20] sm:$0xff] %v1158_v59 }
 0x168   :  { %v1054_v62 = vadd.f32 %v1053_v53, %v1041_v55  ;;  %v1163_v7 = vmul.f32 %v1829_v49, %v1162_v58 }
 0x16a   :  { %v1670_v0 = vmul.f32 -1.442695, %v1054_v62  ;;  %v1164_v1 = vadd.f32 %v1829_v49, %v1163_v7 }
 0x16c   :  { %1830 = vpow2.f32 %v1670_v0  ;;  %v1168_v4 = vsel %vm1167_vm6, %v1829_v49, %v1164_v1 }
 0x16d   :  { %v1042_v5 = vpop.f32.mrf.mxu0  ;;  %v1055_v6 = vpop.f32.mrf.mxu1  ;;  %v1173_v8 = vsel %vm1170_vm7, %v1172_v3, %v1168_v4 }
 0x16e   :  { %1195 = vst [vmem:[#allocation11 + $0x28] sm:$0xff] %v1173_v8 }
 0x172   :  { %v1831_v9 = vpop.eup %1830 }
 0x173   :  { %v1084_v10 = vadd.f32 1.0, %v1831_v9 }
 0x175   :  { %1832 = vrcp.f32 %v1084_v10  ;;  %v1186_v14 = vand.u32 2147483648, %v1084_v10  ;;  %v1184_v16 = vand.u32 2147483647, %v1084_v10  ;;  %vm1180_vm9 = vweird.f32 %v1084_v10 }
 0x177   :  { %v1187_v2 = vor.u32 1.1754944e-38, %v1186_v14  ;;  %vm1185_vm11 = vcmp.eq.f32.partialorder %v1184_v16, 8.507059e+37 }
 0x17b   :  { %v1833_v11 = vpop.eup %1832 }
 0x17c   :  { %v1176_v12 = vmul.f32 %v1833_v11, %v1084_v10  ;;  %vm1181_vm8 = vweird.f32 %v1833_v11 }
 0x17d   :  { %vm1182_vm10 = vmor %vm1180_vm9, %vm1181_vm8 }
 0x17e   :  { %v1177_v13 = vsub.f32 1.0, %v1176_v12 }
 0x180   :  { %v1178_v15 = vmul.f32 %v1833_v11, %v1177_v13 }
 0x182   :  { %v1179_v17 = vadd.f32 %v1833_v11, %v1178_v15 }
 0x184   :  { %v1183_v18 = vsel %vm1182_vm10, %v1833_v11, %v1179_v17 }
 0x185   :  { %v1188_v56 = vsel %vm1185_vm11, %v1187_v2, %v1183_v18 }
 0x186   :  { %1196 = vst [vmem:[#allocation11 + $0x30] sm:$0xff] %v1188_v56 }
 0x187   :  { %1207 = dma.vmem_to_hbm [thread:$0]  %s1203_s4, 896, %s1205_s19, [#allocation4]  }
 0x188   :  { %1984 = dma.done.wait [#allocation4], 896  }
 0x189   :  { %1985 = vsyncadd [#allocation4], 4294966400 }
 0x18a   :  { %1212 = vsyncpa [#allocation3], 1 }
 0x18b   :  { %1213 = vsyncpa [#allocation6], 1 }
 0x18c   :  { %1214 = vsyncpa [#allocation9], 1 }
 0x18d   :  { %1215 = vsyncpa [#allocation4], 1 }

</bundles_post_ra>
